<compile_context>
chip_gen: v6e
topology: v6e:2x2x1
jax: 0.10.0
libtpu: 0.0.40
codegen_flags: <defaults>
</compile_context>

<pallas_src>
import math
from functools import partial

import jax
import jax.numpy as jnp
from jax.experimental import pallas as pl
from jax.experimental.pallas import tpu as pltpu

_SQRT2 = math.sqrt(2.0)


def _gelu_exact(z):
    # PyTorch nn.GELU() default = exact erf formulation (kept for parity).
    return 0.5 * z * (1.0 + jax.lax.erf(z / _SQRT2))


def _gelu_tanh(z):
    # EUP-friendly alternative (enable via approximate_gelu=True).
    return jax.nn.gelu(z, approximate=True)


def _round_up(v, m):
    return ((v + m - 1) // m) * m


def _mlp_kernel(x_ref, t_ref,
                emb_tbl_ref,
                w_in_ref, b_in_ref,
                w_h_ref, b_h_ref,
                w_out_ref, b_out_ref,
                o_ref, *, gelu_fn):
    n_steps_pad = emb_tbl_ref.shape[0]

    # --- fused timestep-embedding gather: one_hot(t) @ emb_table on bf16 MXU ---
    t_col = t_ref[...]                                                  # (TM, 1) i32
    steps = jax.lax.broadcasted_iota(jnp.int32, (1, n_steps_pad), 1)    # (1, S)
    onehot = (t_col == steps).astype(jnp.bfloat16)                      # (TM, S) exact
    emb = jnp.dot(onehot, emb_tbl_ref[...],
                  preferred_element_type=jnp.float32)                   # (TM, H0) f32

    # --- input layer: Linear (bf16 MXU, f32 acc) -> (Dropout=id) -> GELU, +emb ---
    # x arrives f32 from HBM; cast to bf16 in VMEM (cheap VPU op, hidden under
    # MXU/DMA) rather than paying an extra HBM round trip in the wrapper.
    x_bf16 = x_ref[...].astype(jnp.bfloat16)
    h = jnp.dot(x_bf16, w_in_ref[...],
                preferred_element_type=jnp.float32) + b_in_ref[...]
    h = gelu_fn(h) + emb

    # --- hidden layer: Linear -> (Dropout=id) -> GELU ---
    h = jnp.dot(h.astype(jnp.bfloat16), w_h_ref[...],
                preferred_element_type=jnp.float32) + b_h_ref[...]
    h = gelu_fn(h)

    # --- output layer: Linear ---
    o_ref[...] = (jnp.dot(h.astype(jnp.bfloat16), w_out_ref[...],
                          preferred_element_type=jnp.float32)
                  + b_out_ref[...]).astype(o_ref.dtype)


@partial(jax.jit, static_argnames=("tm", "out_dtype", "approximate_gelu"))
def score_model_mlp_forward(x, t, params, *, tm=1024, out_dtype=jnp.float32,
                            approximate_gelu=False):
    """x: (B, input_dim) f32, t: (B,) int32, params: dict of f32 weights."""
    B, input_dim = x.shape
    h0 = params["w_in"].shape[1]
    h1 = params["w_h"].shape[1]
    n_steps = params["emb_table"].shape[0]

    # Row tile: as large as requested, but (a) a sublane multiple of 8 and
    # (b) small enough that there are >= 2 grid steps when B allows, so the
    # "parallel" batch axis shards across both v7x TensorCores.
    tm_eff = max(8, min(tm, _round_up(pl.cdiv(B, 2), 8)))
    grid_m = pl.cdiv(B, tm_eff)
    b_pad = grid_m * tm_eff
    if b_pad != B:
        x = jnp.pad(x, ((0, b_pad - B), (0, 0)))
        t = jnp.pad(t, (0, b_pad - B))

    # Weights as bf16 MXU operands (f32 accumulation in-kernel); biases stay f32.
    w_in = params["w_in"].astype(jnp.bfloat16)
    w_h = params["w_h"].astype(jnp.bfloat16)
    w_out = params["w_out"].astype(jnp.bfloat16)

    # Tiny, VMEM-resident embedding table: bf16, rows padded to a multiple of
    # 16 (bf16 sublane packing); padded rows are zero and never selected.
    n_steps_pad = _round_up(n_steps, 16)
    emb_tbl = jnp.pad(params["emb_table"],
                      ((0, n_steps_pad - n_steps), (0, 0))).astype(jnp.bfloat16)

    t_col = t.astype(jnp.int32).reshape(b_pad, 1)

    def row_spec(d):
        return pl.BlockSpec((tm_eff, d), lambda i: (i, 0))

    def const_spec(shape):
        return pl.BlockSpec(shape, lambda i: (0, 0))

    out_bytes = 2 if out_dtype == jnp.bfloat16 else 4
    flops = 2 * b_pad * (n_steps_pad * h0 + input_dim * h0 + h0 * h1 + h1 * input_dim)
    transcendentals = b_pad * (h0 + h1)
    bytes_accessed = (x.size * 4 + t_col.size * 4
                      + emb_tbl.size * 2
                      + (input_dim * h0 + h0 * h1 + h1 * input_dim) * 2
                      + (h0 + h1 + input_dim) * 4
                      + b_pad * input_dim * out_bytes)

    gelu_fn = _gelu_tanh if approximate_gelu else _gelu_exact
    kernel = partial(_mlp_kernel, gelu_fn=gelu_fn)

    out = pl.pallas_call(
        kernel,
        out_shape=jax.ShapeDtypeStruct((b_pad, input_dim), out_dtype),
        grid_spec=pltpu.PrefetchScalarGridSpec(
            num_scalar_prefetch=0,
            grid=(grid_m,),
            in_specs=[
                row_spec(input_dim),              # x tile (f32, cast in-kernel)
                row_spec(1),                      # t tile (i32)
                const_spec((n_steps_pad, h0)),    # emb table (bf16, resident)
                const_spec((input_dim, h0)),      # w_in (bf16, resident)
                const_spec((1, h0)),              # b_in (f32)
                const_spec((h0, h1)),             # w_h (bf16)
                const_spec((1, h1)),              # b_h (f32)
                const_spec((h1, input_dim)),      # w_out (bf16)
                const_spec((1, input_dim)),       # b_out (f32)
            ],
            out_specs=row_spec(input_dim),
        ),
        compiler_params=pltpu.CompilerParams(
            dimension_semantics=("parallel",),
            vmem_limit_bytes=32 * 1024 * 1024,
        ),
        cost_estimate=pl.CostEstimate(
            flops=flops,
            transcendentals=transcendentals,
            bytes_accessed=bytes_accessed,
        ),
    )(x, t_col, emb_tbl,
      w_in, params["b_in"],
      w_h, params["b_h"],
      w_out, params["b_out"])

    return out[:B]


def init_params(key, input_dim, n_steps, hidden):
    """Deterministic synthetic initialization (PyTorch-like uniform fan-in)."""
    assert len(hidden) == 2, "this script mirrors the default 2-entry hidden list"
    ks = jax.random.split(key, 7)

    def lin(kw, kb, fan_in, fan_out):
        bound = 1.0 / math.sqrt(fan_in)
        w = jax.random.uniform(kw, (fan_in, fan_out), jnp.float32, -bound, bound)
        b = jax.random.uniform(kb, (1, fan_out), jnp.float32, -bound, bound)
        return w, b

    w_in, b_in = lin(ks[0], ks[1], input_dim, hidden[0])
    w_h, b_h = lin(ks[2], ks[3], hidden[0], hidden[1])
    w_out, b_out = lin(ks[4], ks[5], hidden[1], input_dim)
    emb_table = jax.random.normal(ks[6], (n_steps, hidden[0]), jnp.float32)
    return dict(w_in=w_in, b_in=b_in, w_h=w_h, b_h=b_h,
                w_out=w_out, b_out=b_out, emb_table=emb_table)


def reference_forward_f32(x, t, params):
    """Plain-JAX f32 reference mirroring the PyTorch module (eval mode)."""
    h = _gelu_exact(x @ params["w_in"] + params["b_in"]) + params["emb_table"][t]
    h = _gelu_exact(h @ params["w_h"] + params["b_h"])
    return h @ params["w_out"] + params["b_out"]


def reference_forward_bf16(x, t, params):
    """Reference mirroring the kernel's bf16-operand / f32-accumulate recipe."""
    def bdot(a, b):
        return jnp.dot(a.astype(jnp.bfloat16), b.astype(jnp.bfloat16),
                       preferred_element_type=jnp.float32)

    emb = params["emb_table"].astype(jnp.bfloat16).astype(jnp.float32)[t]
    h = _gelu_exact(bdot(x, params["w_in"]) + params["b_in"]) + emb
    h = _gelu_exact(bdot(h, params["w_h"]) + params["b_h"])
    return bdot(h, params["w_out"]) + params["b_out"]


if __name__ == "__main__":
    # Module-default hidden=[128, 128]; lane-dense feature widths; batch sized
    # so the clamped tile gives two grid steps (exercises pipelining + both
    # v7x TensorCores via the parallel batch axis).
    B, input_dim, n_steps = 256, 128, 10
    hidden = [128, 128]

    key = jax.random.PRNGKey(0)
    k_x, k_t, k_p = jax.random.split(key, 3)
    x = jax.random.normal(k_x, (B, input_dim), jnp.float32)
    t = jax.random.randint(k_t, (B,), 0, n_steps, jnp.int32)
    params = init_params(k_p, input_dim, n_steps, hidden)

    out = score_model_mlp_forward(x, t, params)   # default tm=1024, clamped to B//2
    out = jax.block_until_ready(out)

    ref_bf16 = reference_forward_bf16(x, t, params)   # tight: same dtype recipe
    ref_f32 = reference_forward_f32(x, t, params)     # torch semantics, f32

    assert out.shape == (B, input_dim)
    assert out.dtype == jnp.float32
    assert jnp.allclose(out, ref_bf16, atol=1e-2, rtol=1e-2), "mismatch vs bf16 reference"
    assert jnp.allclose(out, ref_f32, atol=5e-2, rtol=5e-2), "mismatch vs f32 reference"
    print("KERNEL_OK")
</pallas_src>

<mosaic_0001>
module attributes {stable_mosaic.version = 11 : i64} {
  func.func @_mlp_kernel(%arg0: i32, %arg1: memref<128x128xf32, #tpu.memory_space<vmem>>, %arg2: memref<128x1xi32, #tpu.memory_space<vmem>>, %arg3: memref<16x128xbf16, #tpu.memory_space<vmem>>, %arg4: memref<128x128xbf16, #tpu.memory_space<vmem>>, %arg5: memref<1x128xf32, #tpu.memory_space<vmem>>, %arg6: memref<128x128xbf16, #tpu.memory_space<vmem>>, %arg7: memref<1x128xf32, #tpu.memory_space<vmem>>, %arg8: memref<128x128xbf16, #tpu.memory_space<vmem>>, %arg9: memref<1x128xf32, #tpu.memory_space<vmem>>, %arg10: memref<128x128xf32, #tpu.memory_space<vmem>>) attributes {dimension_semantics = [#tpu.dimension_semantics<parallel>], iteration_bounds = array<i64: 2>, scalar_prefetch = 0 : i64, scratch_operands = 0 : i64, tpu.core_type = #tpu.core_type<tc>, window_params = [{transform_indices = @transform_0, window_bounds = array<i64: 128, 128>}, {transform_indices = @transform_1, window_bounds = array<i64: 128, 1>}, {pipeline_mode = #tpu.pipeline_mode<synchronous>, transform_indices = @transform_2, window_bounds = array<i64: 16, 128>}, {pipeline_mode = #tpu.pipeline_mode<synchronous>, transform_indices = @transform_3, window_bounds = array<i64: 128, 128>}, {pipeline_mode = #tpu.pipeline_mode<synchronous>, transform_indices = @transform_4, window_bounds = array<i64: 1, 128>}, {pipeline_mode = #tpu.pipeline_mode<synchronous>, transform_indices = @transform_5, window_bounds = array<i64: 128, 128>}, {pipeline_mode = #tpu.pipeline_mode<synchronous>, transform_indices = @transform_6, window_bounds = array<i64: 1, 128>}, {pipeline_mode = #tpu.pipeline_mode<synchronous>, transform_indices = @transform_7, window_bounds = array<i64: 128, 128>}, {pipeline_mode = #tpu.pipeline_mode<synchronous>, transform_indices = @transform_8, window_bounds = array<i64: 1, 128>}, {transform_indices = @transform_9, window_bounds = array<i64: 128, 128>}]} {
    %c0 = arith.constant 0 : index
    %c0_0 = arith.constant 0 : index
    %0 = vector.load %arg2[%c0, %c0_0] : memref<128x1xi32, #tpu.memory_space<vmem>>, vector<128x1xi32>
    %1 = tpu.iota {dimensions = array<i32: 1>} : vector<1x16xi32>
    %2 = vector.broadcast %0 : vector<128x1xi32> to vector<128x16xi32>
    %3 = vector.broadcast %1 : vector<1x16xi32> to vector<128x16xi32>
    %4 = arith.cmpi eq, %2, %3 : vector<128x16xi32>
    %5 = arith.extui %4 : vector<128x16xi1> to vector<128x16xi32>
    %6 = arith.sitofp %5 : vector<128x16xi32> to vector<128x16xf32>
    %7 = arith.truncf %6 : vector<128x16xf32> to vector<128x16xbf16>
    %c0_1 = arith.constant 0 : index
    %c0_2 = arith.constant 0 : index
    %8 = vector.load %arg3[%c0_1, %c0_2] : memref<16x128xbf16, #tpu.memory_space<vmem>>, vector<16x128xbf16>
    %cst = arith.constant dense<0.000000e+00> : vector<128x128xf32>
    %9 = tpu.matmul %7, %8, %cst {dimension_numbers = #tpu.dot_dimension_numbers<[1], [0], [0], [1], [0, 0, 1, 1], [], []>} : vector<128x16xbf16>, vector<16x128xbf16>, vector<128x128xf32> -> vector<128x128xf32>
    %c0_3 = arith.constant 0 : index
    %c0_4 = arith.constant 0 : index
    %10 = vector.load %arg1[%c0_3, %c0_4] : memref<128x128xf32, #tpu.memory_space<vmem>>, vector<128x128xf32>
    %11 = arith.truncf %10 : vector<128x128xf32> to vector<128x128xbf16>
    %c0_5 = arith.constant 0 : index
    %c0_6 = arith.constant 0 : index
    %12 = vector.load %arg4[%c0_5, %c0_6] : memref<128x128xbf16, #tpu.memory_space<vmem>>, vector<128x128xbf16>
    %cst_7 = arith.constant dense<0.000000e+00> : vector<128x128xf32>
    %13 = tpu.matmul %11, %12, %cst_7 {dimension_numbers = #tpu.dot_dimension_numbers<[1], [0], [0], [1], [0, 0, 1, 1], [], []>} : vector<128x128xbf16>, vector<128x128xbf16>, vector<128x128xf32> -> vector<128x128xf32>
    %c0_8 = arith.constant 0 : index
    %c0_9 = arith.constant 0 : index
    %14 = vector.load %arg5[%c0_8, %c0_9] : memref<1x128xf32, #tpu.memory_space<vmem>>, vector<1x128xf32>
    %15 = vector.broadcast %14 : vector<1x128xf32> to vector<128x128xf32>
    %16 = arith.addf %13, %15 : vector<128x128xf32>
    %cst_10 = arith.constant 5.000000e-01 : f32
    %17 = vector.broadcast %cst_10 : f32 to vector<128x128xf32>
    %18 = arith.mulf %17, %16 : vector<128x128xf32>
    %cst_11 = arith.constant 1.41421354 : f32
    %19 = vector.broadcast %cst_11 : f32 to vector<128x128xf32>
    %20 = arith.divf %16, %19 : vector<128x128xf32>
    %21 = math.erf %20 : vector<128x128xf32>
    %cst_12 = arith.constant 1.000000e+00 : f32
    %22 = vector.broadcast %cst_12 : f32 to vector<128x128xf32>
    %23 = arith.addf %22, %21 : vector<128x128xf32>
    %24 = arith.mulf %18, %23 : vector<128x128xf32>
    %25 = arith.addf %24, %9 : vector<128x128xf32>
    %26 = arith.truncf %25 : vector<128x128xf32> to vector<128x128xbf16>
    %c0_13 = arith.constant 0 : index
    %c0_14 = arith.constant 0 : index
    %27 = vector.load %arg6[%c0_13, %c0_14] : memref<128x128xbf16, #tpu.memory_space<vmem>>, vector<128x128xbf16>
    %cst_15 = arith.constant dense<0.000000e+00> : vector<128x128xf32>
    %28 = tpu.matmul %26, %27, %cst_15 {dimension_numbers = #tpu.dot_dimension_numbers<[1], [0], [0], [1], [0, 0, 1, 1], [], []>} : vector<128x128xbf16>, vector<128x128xbf16>, vector<128x128xf32> -> vector<128x128xf32>
    %c0_16 = arith.constant 0 : index
    %c0_17 = arith.constant 0 : index
    %29 = vector.load %arg7[%c0_16, %c0_17] : memref<1x128xf32, #tpu.memory_space<vmem>>, vector<1x128xf32>
    %30 = vector.broadcast %29 : vector<1x128xf32> to vector<128x128xf32>
    %31 = arith.addf %28, %30 : vector<128x128xf32>
    %cst_18 = arith.constant 5.000000e-01 : f32
    %32 = vector.broadcast %cst_18 : f32 to vector<128x128xf32>
    %33 = arith.mulf %32, %31 : vector<128x128xf32>
    %cst_19 = arith.constant 1.41421354 : f32
    %34 = vector.broadcast %cst_19 : f32 to vector<128x128xf32>
    %35 = arith.divf %31, %34 : vector<128x128xf32>
    %36 = math.erf %35 : vector<128x128xf32>
    %cst_20 = arith.constant 1.000000e+00 : f32
    %37 = vector.broadcast %cst_20 : f32 to vector<128x128xf32>
    %38 = arith.addf %37, %36 : vector<128x128xf32>
    %39 = arith.mulf %33, %38 : vector<128x128xf32>
    %40 = arith.truncf %39 : vector<128x128xf32> to vector<128x128xbf16>
    %c0_21 = arith.constant 0 : index
    %c0_22 = arith.constant 0 : index
    %41 = vector.load %arg8[%c0_21, %c0_22] : memref<128x128xbf16, #tpu.memory_space<vmem>>, vector<128x128xbf16>
    %cst_23 = arith.constant dense<0.000000e+00> : vector<128x128xf32>
    %42 = tpu.matmul %40, %41, %cst_23 {dimension_numbers = #tpu.dot_dimension_numbers<[1], [0], [0], [1], [0, 0, 1, 1], [], []>} : vector<128x128xbf16>, vector<128x128xbf16>, vector<128x128xf32> -> vector<128x128xf32>
    %c0_24 = arith.constant 0 : index
    %c0_25 = arith.constant 0 : index
    %43 = vector.load %arg9[%c0_24, %c0_25] : memref<1x128xf32, #tpu.memory_space<vmem>>, vector<1x128xf32>
    %44 = vector.broadcast %43 : vector<1x128xf32> to vector<128x128xf32>
    %45 = arith.addf %42, %44 : vector<128x128xf32>
    %c0_26 = arith.constant 0 : index
    %c0_27 = arith.constant 0 : index
    %46 = vector.load %arg10[%c0_26, %c0_27] : memref<128x128xf32, #tpu.memory_space<vmem>>, vector<128x128xf32>
    tpu.vector_store %arg10[%c0_26, %c0_27], %45 {strides = array<i32>} : memref<128x128xf32, #tpu.memory_space<vmem>>, vector<128x128xf32>,
    return
  }
  func.func @transform_0(%arg0: i32) -> (i32, i32) {
    %c0_i32 = arith.constant 0 : i32
    %c0_i32_0 = arith.constant 0 : i32
    return %arg0, %c0_i32 : i32, i32
  }
  func.func @transform_1(%arg0: i32) -> (i32, i32) {
    %c0_i32 = arith.constant 0 : i32
    %c0_i32_0 = arith.constant 0 : i32
    return %arg0, %c0_i32 : i32, i32
  }
  func.func @transform_2(%arg0: i32) -> (i32, i32) {
    %c0_i32 = arith.constant 0 : i32
    %c0_i32_0 = arith.constant 0 : i32
    %c0_i32_1 = arith.constant 0 : i32
    return %c0_i32, %c0_i32_0 : i32, i32
  }
  func.func @transform_3(%arg0: i32) -> (i32, i32) {
    %c0_i32 = arith.constant 0 : i32
    %c0_i32_0 = arith.constant 0 : i32
    %c0_i32_1 = arith.constant 0 : i32
    return %c0_i32, %c0_i32_0 : i32, i32
  }
  func.func @transform_4(%arg0: i32) -> (i32, i32) {
    %c0_i32 = arith.constant 0 : i32
    %c0_i32_0 = arith.constant 0 : i32
    %c0_i32_1 = arith.constant 0 : i32
    return %c0_i32, %c0_i32_0 : i32, i32
  }
  func.func @transform_5(%arg0: i32) -> (i32, i32) {
    %c0_i32 = arith.constant 0 : i32
    %c0_i32_0 = arith.constant 0 : i32
    %c0_i32_1 = arith.constant 0 : i32
    return %c0_i32, %c0_i32_0 : i32, i32
  }
  func.func @transform_6(%arg0: i32) -> (i32, i32) {
    %c0_i32 = arith.constant 0 : i32
    %c0_i32_0 = arith.constant 0 : i32
    %c0_i32_1 = arith.constant 0 : i32
    return %c0_i32, %c0_i32_0 : i32, i32
  }
  func.func @transform_7(%arg0: i32) -> (i32, i32) {
    %c0_i32 = arith.constant 0 : i32
    %c0_i32_0 = arith.constant 0 : i32
    %c0_i32_1 = arith.constant 0 : i32
    return %c0_i32, %c0_i32_0 : i32, i32
  }
  func.func @transform_8(%arg0: i32) -> (i32, i32) {
    %c0_i32 = arith.constant 0 : i32
    %c0_i32_0 = arith.constant 0 : i32
    %c0_i32_1 = arith.constant 0 : i32
    return %c0_i32, %c0_i32_0 : i32, i32
  }
  func.func @transform_9(%arg0: i32) -> (i32, i32) {
    %c0_i32 = arith.constant 0 : i32
    %c0_i32_0 = arith.constant 0 : i32
    return %arg0, %c0_i32 : i32, i32
  }
}

</mosaic_0001>

<bundles_post_ra>
// kernel: score_model_mlp_forward.1
= control target key start
LH: loop header
LB: loop body
LE: loop exit
PB: predicated region body
PF: predicated region fallthrough
CT: control target
= control target key end

     0   :  { %14 = vsyncpa [#allocation3], 0  ;;  %s2310_s0 = inlined_call_operand.vmem [shape: f32[256,128], index: 0, kind: input, shape index: {}]   ;;  %s2311_s1 = inlined_call_operand.vmem [shape: s32[256,1], index: 1, kind: input, shape index: {}]   ;;  %s2312_s2 = inlined_call_operand.vmem [shape: bf16[16,128], index: 2, kind: input, shape index: {}]   ;;  %s2313_s3 = inlined_call_operand.vmem [shape: bf16[128,128], index: 3, kind: input, shape index: {}]   ;;  %s2314_s4 = inlined_call_operand.vmem [shape: f32[1,128], index: 4, kind: input, shape index: {}]   ;;  %s2315_s5 = inlined_call_operand.vmem [shape: bf16[128,128], index: 5, kind: input, shape index: {}]   ;;  %s2316_s6 = inlined_call_operand.vmem [shape: f32[1,128], index: 6, kind: input, shape index: {}]   ;;  %s2317_s7 = inlined_call_operand.vmem [shape: bf16[128,128], index: 7, kind: input, shape index: {}]   ;;  %s2318_s8 = inlined_call_operand.vmem [shape: f32[1,128], index: 8, kind: input, shape index: {}]   ;;  %s2319_s9 = inlined_call_operand.hbm [shape: f32[256,128], index: 9, kind: output, shape index: {}]  }
   0x1   :  { %16 = vsyncpa [#allocation3 + $0x1], 0  ;;  %s1939_s30 = smov 0   ;;  %s1941_s10 = smov 0  }
   0x2   :  { %s1943_s11 = smov 0   ;;  %s1945_s12 = smov 0  }
   0x3 LB: > { %s1960_s13 = sadd.s32 4294967295, %s1882_s12   ;;  %s1434_s14 = sadd.s32 4294967294, %s1882_s12   ;;  %s1882_s12 = sphi %s1945_s12, %s2325_s12   ;;  %s1878_s11 = sphi %s1943_s11, %s2324_s11   ;;  %s1874_s10 = sphi %s1941_s10, %s2323_s10   ;;  %s1870_s30 = sphi %s1939_s30, %s2322_s30  }
   0x4   : > { %s1964_s15 = sadd.s32 1, %s1882_s12   ;;  %s228_s16 = sadd.s32 1, %s1878_s11 }
   0x5   : > { %s225_s17 = ssub.s32 %s1882_s12, %s1964_s15  ;;  %p238_p0 = scmp.ne.s32.totalorder %s1878_s11, %s1874_s10 }
   0x6   : > { %p226_p1 = scmp.eq.s32.totalorder %s225_s17, 0  ;;  %p239_p2 = scmp.eq.s32.totalorder %s1960_s13, 1 }
   0x7   : > { %p244_p3 = scmp.ne.s32.totalorder %s1874_s10, %s1870_s30  ;;  %p245_p4 = scmp.eq.s32.totalorder %s1434_s14, 1 }
   0x8   : > { %s1975_s18 = scalar_select %p226_p1, %s1878_s11, %s228_s16  }
   0x9   : > { %p1977_p5 = por %p239_p2, %p238_p0  ;;  %p1981_p6 = por %p245_p4, %p244_p3 }
   0xa   : > { %p1437_p7 = scmp.ge.s32.totalorder %s1882_s12, 1  ;;  %p302_p8 = scmp.lt.s32.totalorder %s1882_s12, 3 }
   0xc   : > { %p303_p9 = pnand %p1437_p7, %p302_p8 }
   0xd   : > { %s1439_s21 = sshll.u32 (!%p303_p9), %s1960_s13, 4  ;;  %s1500_s28 = sshll.u32 (!%p303_p9), %s1960_s13, 11 }
   0xe   : > { %306 = sbr.rel (%p303_p9) target bundleno = 825 (0x339), region = 56  ;;  %p344_p10 = scmp.lt.s32.totalorder (!%p303_p9), %s1439_s21, 31 }
   0xf   : > { %s1886_s23 = smov (!%p303_p9), [#allocation2]  }
  0x13   : > { %v1884_v0 = vmov 0   ;;  %v1733_v1 = vld [vmem:[%s2313_s3 + $0x38] sm:$0xff]   ;;  %v1734_v2 = vld [vmem:[%s2313_s3 + $0x30] sm:$0xff]   ;;  %s2327_s21 = smov (!%p344_p10, %s1439_s21), 31  ;;  %v1735_v3 = vld [vmem:[%s2313_s3 + $0x28] sm:$0xff]   ;;  %v373_v50 = vlaneseq  ;;  %vm487_vm4 = vcmask 130048  }
  0x14   : > { %1732 = vset.pattern.permute.xlu1 %v1884_v0  ;;  %1731 = vset.pattern.permute.xlu0 %v1884_v0  ;;  %s1440_s26 = sshll.u32 %s2327_s21, 3  ;;  %v1736_v8 = vld [vmem:[%s2313_s3 + $0x20] sm:$0xff]   ;;  %v1737_v12 = vld [vmem:[%s2313_s3 + $0x18] sm:$0xff]   ;;  %v1738_v17 = vld [vmem:[%s2313_s3 + $0x10] sm:$0xff]   ;;  %v1885_v57 = vmov 0.0   ;;  %s2262_s21 = scalar_lea.hbm %s2319_s9, %s1500_s28 }
  0x15   : > { %1576 = vmatprep.subr.bf16.mxu1 %v1733_v1  ;;  %s1997_s29 = scalar_lea.vmem %s2311_s1, %s1440_s26  ;;  %s2012_s24 = scalar_lea.vmem %s2310_s0, %s1440_s26  ;;  %v1741_v20 = vld [vmem:[%s2312_s2] sm:$0xff]   ;;  %v1739_v21 = vld [vmem:[%s2313_s3 + $0x8] sm:$0xff]   ;;  %v1742_v51 = vld [vmem:[%s2315_s5 + $0x38] sm:$0xff]   ;;  %v2060_v52 = vand.u32 127, %v373_v50 }
  0x16   : > { %1577 = vmatpush3.bf16.msra.mxu1 %v1733_v1  ;;  %v359_v4 = vld [vmem:[%s1997_s29 + $0x10] sm:$0xff]  ;;  %v357_v5 = vld [vmem:[%s1997_s29] sm:$0xff]  ;;  %v360_v6 = vld [vmem:[%s1997_s29 + $0x18] sm:$0xff]  ;;  %1558 = vmatprep.subr.bf16.mxu0 %v1741_v20 }
  0x17   : > { %1578 = vmatprep.subr.bf16.mxu1 %v1734_v2  ;;  %382 = vperm.xlu1 %1732, %v359_v4   ;;  %v358_v7 = vld [vmem:[%s1997_s29 + $0x8] sm:$0xff]  ;;  %v361_v10 = vld [vmem:[%s1997_s29 + $0x20] sm:$0xff]  ;;  %v364_v15 = vld [vmem:[%s1997_s29 + $0x38] sm:$0xff] }
  0x18   : > { %376 = vperm.xlu0 %1731, %v357_v5   ;;  %v362_v9 = vld [vmem:[%s1997_s29 + $0x28] sm:$0xff]  ;;  %v609_v11 = vld [vmem:[%s2012_s24] sm:$0xff]  ;;  %v363_v16 = vld [vmem:[%s1997_s29 + $0x30] sm:$0xff]  ;;  %1559 = vmatpush3.bf16.msra.mxu0 %v1741_v20 }
  0x19   : > { %v610_v13 = vld [vmem:[%s2012_s24 + $0x8] sm:$0xff]  ;;  %v365_v19 = vld [vmem:[%s1997_s29 + $0x40] sm:$0xff]  ;;  %v368_v22 = vld [vmem:[%s1997_s29 + $0x58] sm:$0xff]  ;;  %1608 = vmatprep.subr.bf16.mxu0 %v1742_v51 }
  0x1a   : > { %1579 = vmatpush3.bf16.msra.mxu1 %v1734_v2  ;;  %v625_v14 = vpack.c.bf16 %v610_v13, %v609_v11  ;;  %v366_v18 = vld [vmem:[%s1997_s29 + $0x48] sm:$0xff]  ;;  %v367_v23 = vld [vmem:[%s1997_s29 + $0x50] sm:$0xff]  ;;  %v1740_v24 = vld [vmem:[%s2313_s3] sm:$0xff]  }
  0x1b   : > { %1580 = vmatprep.subr.bf16.mxu1 %v1735_v3  ;;  %385 = vperm.xlu1 %1732, %v360_v6   ;;  %v370_v25 = vld [vmem:[%s1997_s29 + $0x68] sm:$0xff]  ;;  %v369_v26 = vld [vmem:[%s1997_s29 + $0x60] sm:$0xff]  ;;  %v611_v27 = vld [vmem:[%s2012_s24 + $0x10] sm:$0xff] }
  0x1c   : > { %379 = vperm.xlu0 %1731, %v358_v7   ;;  %1592 = vmatprep.mubr.bf16.mxu1 %v625_v14  ;;  %v612_v28 = vld [vmem:[%s2012_s24 + $0x18] sm:$0xff]  ;;  %v613_v29 = vld [vmem:[%s2012_s24 + $0x20] sm:$0xff]  ;;  %v614_v30 = vld [vmem:[%s2012_s24 + $0x28] sm:$0xff] }
  0x1d   : > { %v372_v31 = vld [vmem:[%s1997_s29 + $0x78] sm:$0xff]  ;;  %v371_v32 = vld [vmem:[%s1997_s29 + $0x70] sm:$0xff]  ;;  %v626_v33 = vpack.c.bf16 %v612_v28, %v611_v27  ;;  %v627_v34 = vpack.c.bf16 %v614_v30, %v613_v29  ;;  %v617_v37 = vld [vmem:[%s2012_s24 + $0x40] sm:$0xff]  ;;  %s340_s29 = sand.u32 1, %s1874_s10  }
  0x1e   : > { %1581 = vmatpush3.bf16.msra.mxu1 %v1735_v3  ;;  %v615_v35 = vld [vmem:[%s2012_s24 + $0x30] sm:$0xff]  ;;  %v616_v36 = vld [vmem:[%s2012_s24 + $0x38] sm:$0xff]  ;;  %v618_v38 = vld [vmem:[%s2012_s24 + $0x48] sm:$0xff]  ;;  %s1438_s25 = sshll.u32 %s340_s29, 7  ;;  %s2270_s13 = scalar_lea.sflag [#allocation3], %s340_s29 }
  0x1f   : > { %1582 = vmatprep.subr.bf16.mxu1 %v1736_v8  ;;  %391 = vperm.xlu1 %1732, %v362_v9   ;;  %v628_v39 = vpack.c.bf16 %v616_v36, %v615_v35  ;;  %v629_v40 = vpack.c.bf16 %v618_v38, %v617_v37  ;;  %v619_v41 = vld [vmem:[%s2012_s24 + $0x50] sm:$0xff]  ;;  %v620_v42 = vld [vmem:[%s2012_s24 + $0x58] sm:$0xff]  ;;  %v621_v43 = vld [vmem:[%s2012_s24 + $0x60] sm:$0xff]  ;;  %s2241_s26 = scalar_lea.vmem [#allocation2], %s1438_s25  ;;  %s1826_s25 = sshll.u32 %s1886_s23, 4  ;;  %s1827_s25 = int_to_ptr.vmem [resolvable:$false] %s1826_s25 }
  0x20   : > { %388 = vperm.xlu0 %1731, %v361_v10   ;;  %v622_v44 = vld [vmem:[%s2012_s24 + $0x68] sm:$0xff]  ;;  %v630_v45 = vpack.c.bf16 %v620_v42, %v619_v41  ;;  %v623_v47 = vld [vmem:[%s2012_s24 + $0x70] sm:$0xff]  ;;  %v624_v48 = vld [vmem:[%s2012_s24 + $0x78] sm:$0xff]  ;;  %s1360_s14 = sshll.u32 %s2241_s26, 4  ;;  %s1828_s24 = scalar_lea.vmem %s1827_s25, 4096  ;;  %s2264_s14 = int_to_ptr.vmem [resolvable:$true] %s1360_s14 }
  0x21   : > { %v631_v46 = vpack.c.bf16 %v622_v44, %v621_v43  ;;  %v632_v49 = vpack.c.bf16 %v624_v48, %v623_v47  ;;  %v1743_v2 = vld [vmem:[%s2315_s5 + $0x30] sm:$0xff]   ;;  %v1745_v14 = vld [vmem:[%s2315_s5 + $0x20] sm:$0xff]   ;;  %v1746_v20 = vld [vmem:[%s2315_s5 + $0x18] sm:$0xff]   ;;  %s1822_s22 = scalar_lea.vmem %s2264_s14, 2048  ;;  %p1829_p0 = scmp.lt.s32.totalorder %s2264_s14, %s1827_s25 }
  0x22   : > { %1583 = vmatpush3.bf16.msra.mxu1 %v1736_v8  ;;  %v1744_v8 = vld [vmem:[%s2315_s5 + $0x28] sm:$0xff]   ;;  %v1749_v36 = vld [vmem:[%s2315_s5] sm:$0xff]   ;;  %p1823_p11 = scmp.ne.s32.totalorder %s2264_s14, %s1822_s22  ;;  %p1830_p1 = scmp.lt.s32.totalorder %s1828_s24, %s1822_s22 }
  0x23   : > { %1584 = vmatprep.subr.bf16.mxu1 %v1737_v12  ;;  %397 = vperm.xlu1 %1732, %v364_v15   ;;  %v1748_v35 = vld [vmem:[%s2315_s5 + $0x8] sm:$0xff]  }
  0x24   : > { %394 = vperm.xlu0 %1731, %v363_v16   ;;  %p1824_p12 = pnand %p1823_p11, %p1977_p5  ;;  %p1831_p2 = por %p1830_p1, %p1829_p0 }
  0x26   : > { %1585 = vmatpush3.bf16.msra.mxu1 %v1737_v12  ;;  %p1825_p13 = pneg %p1824_p12 }
  0x27   : > { %1586 = vmatprep.subr.bf16.mxu1 %v1738_v17  ;;  %403 = vperm.xlu1 %1732, %v366_v18  }
  0x28   : > { %400 = vperm.xlu0 %1731, %v365_v19   ;;  %p1832_p3 = pnand %p1831_p2, %p1825_p13 }
  0x2a   : > { %1587 = vmatpush3.bf16.msra.mxu1 %v1738_v17 }
  0x2b   : > { %1588 = vmatprep.subr.bf16.mxu1 %v1739_v21  ;;  %409 = vperm.xlu1 %1732, %v368_v22  }
  0x2c   : > { %406 = vperm.xlu0 %1731, %v367_v23  }
  0x2e   : > { %1589 = vmatpush3.bf16.msra.mxu1 %v1739_v21 }
  0x2f   : > { %1590 = vmatprep.subr.bf16.mxu1 %v1740_v24  ;;  %415 = vperm.xlu1 %1732, %v370_v25  }
  0x30   : > { %412 = vperm.xlu0 %1731, %v369_v26   ;;  %v1747_v26 = vld [vmem:[%s2315_s5 + $0x10] sm:$0xff]  }
  0x32   : > { %1591 = vmatpush3.bf16.msra.mxu1 %v1740_v24 }
  0x33   : > { %421 = vperm.xlu1 %1732, %v372_v31  }
  0x34   : > { %418 = vperm.xlu0 %1731, %v371_v32  }
  0x35   : > { %1593 = vmatmul.mubr.bf16.vlgmr.msra.gmra.mxu1 %v626_v33 }
  0x36   : > { %1596 = vmatprep.mubr.bf16.mxu1 %v627_v34 }
  0x3d   : > { %1597 = vmatmul.mubr.bf16.gmra.mxu1 %v628_v39 }
  0x3e   : > { %1600 = vmatprep.mubr.bf16.mxu1 %v629_v40 }
  0x45   : > { %1601 = vmatmul.mubr.bf16.gmra.mxu1 %v630_v45 }
  0x46   : > { %1604 = vmatprep.mubr.bf16.mxu1 %v631_v46  ;;  %v1468_v46 = vld [vmem:[%s2314_s4] ss:$0 sm:$0xff] }
  0x4d   : > { %1605 = vmatmul.mubr.bf16.gmra.mxu1 %v632_v49 }
  0x92   : > { %v383_v53 = vpop.permute.xlu1 %382 }
  0x93   : > { %v377_v54 = vpop.permute.xlu0 %376  ;;  %vm425_vm0 = vcmp.eq.s32.totalorder %v383_v53, %v2060_v52 }
  0x94   : > { %vm423_vm1 = vcmp.eq.s32.totalorder %v377_v54, %v2060_v52  ;;  %v1445_v58 = vsel %vm425_vm0, 1.0, %v1885_v57 }
  0x95   : > { %v1443_v59 = vsel %vm423_vm1, 1.0, %v1885_v57 }
  0x96   : > { %v386_v55 = vpop.permute.xlu1 %385 }
  0x97   : > { %v380_v56 = vpop.permute.xlu0 %379  ;;  %vm426_vm2 = vcmp.eq.s32.totalorder %v386_v55, %v2060_v52 }
  0x98   : > { %vm424_vm3 = vcmp.eq.s32.totalorder %v380_v56, %v2060_v52  ;;  %v1446_v60 = vsel %vm426_vm2, 1.0, %v1885_v57 }
  0x99   : > { %v1444_v61 = vsel %vm424_vm3, 1.0, %v1885_v57  ;;  %v472_v62 = vpack.c.bf16 %v1446_v60, %v1445_v58 }
  0x9a   : > { %v471_v63 = vpack.c.bf16 %v1444_v61, %v1443_v59  ;;  %v392_v0 = vpop.permute.xlu1 %391 }
  0x9b   : > { %v389_v1 = vpop.permute.xlu0 %388  ;;  %vm428_vm5 = vcmp.eq.s32.totalorder %v392_v0, %v2060_v52 }
  0x9c   : > { %vm427_vm6 = vcmp.eq.s32.totalorder %v389_v1, %v2060_v52  ;;  %1560 = vmatprep.mubr.msk.bf16.mxu0 %vm487_vm4, %v471_v63  ;;  %v1448_v3 = vsel %vm428_vm5, 1.0, %v1885_v57 }
  0x9d   : > { %v1447_v4 = vsel %vm427_vm6, 1.0, %v1885_v57  ;;  %1561 = vmatmul.mubr.msk.bf16.vlgmr.msra.gmra.mxu0 %vm487_vm4, %v472_v62 }
  0x9e   : > { %v473_v5 = vpack.c.bf16 %v1448_v3, %v1447_v4  ;;  %1609 = vmatpush3.bf16.msra.mxu0 %v1742_v51  ;;  %v398_v6 = vpop.permute.xlu1 %397 }
  0x9f   : > { %v395_v7 = vpop.permute.xlu0 %394  ;;  %1610 = vmatprep.subr.bf16.mxu0 %v1743_v2  ;;  %vm430_vm7 = vcmp.eq.s32.totalorder %v398_v6, %v2060_v52 }
  0xa0   : > { %vm429_vm8 = vcmp.eq.s32.totalorder %v395_v7, %v2060_v52  ;;  %1564 = vmatprep.mubr.msk.bf16.mxu0 %vm487_vm4, %v473_v5  ;;  %v1450_v9 = vsel %vm430_vm7, 1.0, %v1885_v57 }
  0xa1   : > { %v1449_v10 = vsel %vm429_vm8, 1.0, %v1885_v57 }
  0xa2   : > { %v474_v11 = vpack.c.bf16 %v1450_v9, %v1449_v10  ;;  %1611 = vmatpush3.bf16.msra.mxu0 %v1743_v2  ;;  %v404_v12 = vpop.permute.xlu1 %403 }
  0xa3   : > { %v401_v13 = vpop.permute.xlu0 %400  ;;  %1612 = vmatprep.subr.bf16.mxu0 %v1744_v8  ;;  %vm432_vm9 = vcmp.eq.s32.totalorder %v404_v12, %v2060_v52 }
  0xa4   : > { %vm431_vm10 = vcmp.eq.s32.totalorder %v401_v13, %v2060_v52  ;;  %v1452_v15 = vsel %vm432_vm9, 1.0, %v1885_v57 }
  0xa5   : > { %v1451_v16 = vsel %vm431_vm10, 1.0, %v1885_v57  ;;  %1565 = vmatmul.mubr.msk.bf16.gmra.mxu0 %vm487_vm4, %v474_v11 }
  0xa6   : > { %v475_v17 = vpack.c.bf16 %v1452_v15, %v1451_v16  ;;  %1613 = vmatpush3.bf16.msra.mxu0 %v1744_v8  ;;  %v410_v18 = vpop.permute.xlu1 %409 }
  0xa7   : > { %v407_v19 = vpop.permute.xlu0 %406  ;;  %1614 = vmatprep.subr.bf16.mxu0 %v1745_v14  ;;  %vm434_vm11 = vcmp.eq.s32.totalorder %v410_v18, %v2060_v52 }
  0xa8   : > { %vm433_vm12 = vcmp.eq.s32.totalorder %v407_v19, %v2060_v52  ;;  %1568 = vmatprep.mubr.msk.bf16.mxu0 %vm487_vm4, %v475_v17  ;;  %v1454_v21 = vsel %vm434_vm11, 1.0, %v1885_v57 }
  0xa9   : > { %v1453_v22 = vsel %vm433_vm12, 1.0, %v1885_v57 }
  0xaa   : > { %v476_v23 = vpack.c.bf16 %v1454_v21, %v1453_v22  ;;  %1615 = vmatpush3.bf16.msra.mxu0 %v1745_v14  ;;  %v416_v24 = vpop.permute.xlu1 %415 }
  0xab   : > { %v413_v25 = vpop.permute.xlu0 %412  ;;  %1616 = vmatprep.subr.bf16.mxu0 %v1746_v20  ;;  %vm436_vm13 = vcmp.eq.s32.totalorder %v416_v24, %v2060_v52 }
  0xac   : > { %vm435_vm14 = vcmp.eq.s32.totalorder %v413_v25, %v2060_v52  ;;  %v1456_v27 = vsel %vm436_vm13, 1.0, %v1885_v57 }
  0xad   : > { %v1455_v28 = vsel %vm435_vm14, 1.0, %v1885_v57  ;;  %1569 = vmatmul.mubr.msk.bf16.gmra.mxu0 %vm487_vm4, %v476_v23 }
  0xae   : > { %v477_v29 = vpack.c.bf16 %v1456_v27, %v1455_v28  ;;  %1617 = vmatpush3.bf16.msra.mxu0 %v1746_v20  ;;  %v422_v30 = vpop.permute.xlu1 %421 }
  0xaf   : > { %v419_v31 = vpop.permute.xlu0 %418  ;;  %1618 = vmatprep.subr.bf16.mxu0 %v1747_v26  ;;  %vm438_vm15 = vcmp.eq.s32.totalorder %v422_v30, %v2060_v52 }
  0xb0   : > { %vm437_vm0 = vcmp.eq.s32.totalorder %v419_v31, %v2060_v52  ;;  %1572 = vmatprep.mubr.msk.bf16.mxu0 %vm487_vm4, %v477_v29  ;;  %v1458_v32 = vsel %vm438_vm15, 1.0, %v1885_v57 }
  0xb1   : > { %v1457_v33 = vsel %vm437_vm0, 1.0, %v1885_v57 }
  0xb2   : > { %v478_v34 = vpack.c.bf16 %v1458_v32, %v1457_v33  ;;  %1619 = vmatpush3.bf16.msra.mxu0 %v1747_v26 }
  0xb3   : > { %1620 = vmatprep.subr.bf16.mxu0 %v1748_v35 }
  0xb5   : > { %1573 = vmatmul.mubr.msk.bf16.gmra.mxu0 %vm487_vm4, %v478_v34 }
  0xb6   : > { %1621 = vmatpush3.bf16.msra.mxu0 %v1748_v35 }
  0xb7   : > { %1622 = vmatprep.subr.bf16.mxu0 %v1749_v36 }
  0xba   : > { %1623 = vmatpush3.bf16.msra.mxu0 %v1749_v36 }
  0xf5   : > { %v1594_v37 = vpop.f32.mrf.mxu1 }
  0xf6   : > { %v747_v51 = vadd.f32 %v1594_v37, %v1468_v46 }
  0xf7   : > { %v738_v38 = vpop.f32.mrf.mxu1 }
  0xf8   : > { %v739_v48 = vadd.f32 %v1468_v46, %v738_v38  ;;  %v820_v56 = vmul.f32 0.70710677, %v747_v51  ;;  %v803_v28 = vmul.f32 0.5, %v747_v51 }
  0xf9   : > { %v1595_v39 = vpop.f32.mrf.mxu1 }
  0xfa   : > { %v750_v49 = vadd.f32 %v1595_v39, %v1468_v46  ;;  %v818_v53 = vmul.f32 0.70710677, %v739_v48  ;;  %v801_v18 = vmul.f32 0.5, %v739_v48 }
  0xfb   : > { %v741_v40 = vpop.f32.mrf.mxu1 }
  0xfc   : > { %v742_v50 = vadd.f32 %v1468_v46, %v741_v40  ;;  %v821_v54 = vmul.f32 0.70710677, %v750_v49  ;;  %1758 = verf.f32 %v818_v53  ;;  %v804_v19 = vmul.f32 0.5, %v750_v49 }
  0xfd   : > { %v1598_v41 = vpop.f32.mrf.mxu1 }
  0xfe   : > { %v819_v55 = vmul.f32 0.70710677, %v742_v50  ;;  %1760 = verf.f32 %v821_v54  ;;  %v2128_v61 = vadd.f32 %v1598_v41, %v1468_v46  ;;  %v802_v21 = vmul.f32 0.5, %v742_v50 }
  0xff   : > { %v754_v42 = vpop.f32.mrf.mxu1 }
 0x100   : > { %v755_v58 = vadd.f32 %v1468_v46, %v754_v42  ;;  %1762 = verf.f32 %v819_v55  ;;  %v824_v2 = vmul.f32 0.70710677, %v2128_v61 }
 0x101   : > { %v1599_v43 = vpop.f32.mrf.mxu1  ;;  %1764 = verf.f32 %v820_v56 }
 0x102   : > { %v766_v59 = vadd.f32 %v1599_v43, %v1468_v46  ;;  %v822_v63 = vmul.f32 0.70710677, %v755_v58  ;;  %v805_v42 = vmul.f32 0.5, %v755_v58  ;;  %v807_v58 = vmul.f32 0.5, %v2128_v61 }
 0x103   : > { %v757_v44 = vpop.f32.mrf.mxu1 }
 0x104   : > { %v2126_v60 = vadd.f32 %v1468_v46, %v757_v44  ;;  %v825_v0 = vmul.f32 0.70710677, %v766_v59  ;;  %1766 = verf.f32 %v822_v63  ;;  %v808_v48 = vmul.f32 0.5, %v766_v59 }
 0x105   : > { %v1602_v45 = vpop.f32.mrf.mxu1 }
 0x106   : > { %v823_v1 = vmul.f32 0.70710677, %v2126_v60  ;;  %1768 = verf.f32 %v825_v0  ;;  %v2138_v7 = vadd.f32 %v1602_v45, %v1468_v46  ;;  %v806_v51 = vmul.f32 0.5, %v2126_v60 }
 0x107   : > { %v770_v47 = vpop.f32.mrf.mxu1 }
 0x108   : > { %v2132_v4 = vadd.f32 %v1468_v46, %v770_v47  ;;  %1770 = verf.f32 %v823_v1  ;;  %v828_v15 = vmul.f32 0.70710677, %v2138_v7 }
 0x109   : > { %v1603_v52 = vpop.f32.mrf.mxu1  ;;  %1772 = verf.f32 %v824_v2  ;;  %v1759_v10 = vpop.eup %1758 }
 0x10a   : > { %v2134_v5 = vadd.f32 %v1603_v52, %v1468_v46  ;;  %v826_v9 = vmul.f32 0.70710677, %v2132_v4  ;;  %v850_v26 = vadd.f32 1.0, %v1759_v10  ;;  %v809_v61 = vmul.f32 0.5, %v2132_v4 }
 0x10b   : > { %v773_v57 = vpop.f32.mrf.mxu1  ;;  %v1761_v12 = vpop.eup %1760 }
 0x10c   : > { %v2136_v6 = vadd.f32 %v1468_v46, %v773_v57  ;;  %v829_v11 = vmul.f32 0.70710677, %v2134_v5  ;;  %1774 = verf.f32 %v826_v9  ;;  %v853_v24 = vadd.f32 1.0, %v1761_v12 }
 0x10d   : > { %v1606_v62 = vpop.f32.mrf.mxu1  ;;  %v1763_v14 = vpop.eup %1762  ;;  %v866_v39 = vmul.f32 %v850_v26, %v801_v18 }
 0x10e   : > { %v827_v13 = vmul.f32 0.70710677, %v2136_v6  ;;  %v1765_v17 = vpop.eup %1764  ;;  %1776 = verf.f32 %v829_v11  ;;  %v851_v27 = vadd.f32 1.0, %v1763_v14  ;;  %v2150_v29 = vadd.f32 %v1606_v62, %v1468_v46 }
 0x10f   : > { %v786_v3 = vpop.f32.mrf.mxu1  ;;  %v852_v30 = vadd.f32 1.0, %v1765_v17  ;;  %v869_v36 = vmul.f32 %v853_v24, %v804_v19 }
 0x110   : > { %v2144_v20 = vadd.f32 %v1468_v46, %v786_v3  ;;  %1778 = verf.f32 %v827_v13  ;;  %v867_v40 = vmul.f32 %v851_v27, %v802_v21  ;;  %v832_v43 = vmul.f32 0.70710677, %v2150_v29 }
 0x111   : > { %v1607_v8 = vpop.f32.mrf.mxu1  ;;  %1780 = verf.f32 %v828_v15  ;;  %v1767_v33 = vpop.eup %1766  ;;  %v868_v44 = vmul.f32 %v852_v30, %v803_v28  ;;  %v810_v21 = vmul.f32 0.5, %v2136_v6  ;;  %v811_v27 = vmul.f32 0.5, %v2138_v7 }
 0x112   : > { %v2146_v22 = vadd.f32 %v1607_v8, %v1468_v46  ;;  %v830_v32 = vmul.f32 0.70710677, %v2144_v20  ;;  %v854_v56 = vadd.f32 1.0, %v1767_v33  ;;  %v813_v7 = vmul.f32 0.5, %v2144_v20 }
 0x113   : > { %v789_v16 = vpop.f32.mrf.mxu1  ;;  %v1769_v37 = vpop.eup %1768 }
 0x114   : > { %v2148_v25 = vadd.f32 %v1468_v46, %v789_v16  ;;  %v833_v34 = vmul.f32 0.70710677, %v2146_v22  ;;  %1782 = verf.f32 %v830_v32  ;;  %v857_v54 = vadd.f32 1.0, %v1769_v37 }
 0x115   : > { %v1771_v41 = vpop.eup %1770  ;;  %v870_v3 = vmul.f32 %v854_v56, %v805_v42  ;;  %v812_v16 = vmul.f32 0.5, %v2134_v5  ;;  %v816_v42 = vmul.f32 0.5, %v2146_v22 }
 0x116   : > { %v831_v38 = vmul.f32 0.70710677, %v2148_v25  ;;  %v1773_v47 = vpop.eup %1772  ;;  %1784 = verf.f32 %v833_v34  ;;  %v855_v57 = vadd.f32 1.0, %v1771_v41  ;;  %v873_v2 = vmul.f32 %v857_v54, %v808_v48 }
 0x117   : > { %v856_v63 = vadd.f32 1.0, %v1773_v47 }
 0x118   : > { %1786 = verf.f32 %v831_v38  ;;  %v871_v8 = vmul.f32 %v855_v57, %v806_v51 }
 0x119   : > { %1788 = verf.f32 %v832_v43  ;;  %v1775_v59 = vpop.eup %1774  ;;  %v872_v10 = vmul.f32 %v856_v63, %v807_v58 }
 0x11a   : > { %v858_v24 = vadd.f32 1.0, %v1775_v59 }
 0x11b   : > { %v1777_v60 = vpop.eup %1776 }
 0x11c   : > { %v861_v19 = vadd.f32 1.0, %v1777_v60  ;;  %v874_v5 = vmul.f32 %v858_v24, %v809_v61  ;;  %v1753_v60 = vld [vmem:[%s2317_s7 + $0x20] sm:$0xff]  }
 0x11d   : > { %v1779_v9 = vpop.eup %1778 }
 0x11e   : > { %v1781_v13 = vpop.eup %1780  ;;  %v859_v26 = vadd.f32 1.0, %v1779_v9  ;;  %v877_v34 = vmul.f32 %v861_v19, %v812_v16  ;;  %v1756_v9 = vld [vmem:[%s2317_s7 + $0x8] sm:$0xff]  }
 0x11f   : > { %v860_v30 = vadd.f32 1.0, %v1781_v13 }
 0x121   : > { %v1783_v32 = vpop.eup %1782  ;;  %v876_v37 = vmul.f32 %v860_v30, %v811_v27 }
 0x122   : > { %v862_v48 = vadd.f32 1.0, %v1783_v32 }
 0x123   : > { %v1785_v4 = vpop.eup %1784 }
 0x124   : > { %v878_v20 = vmul.f32 %v862_v48, %v813_v7 }
 0x15d   : > { %v1562_v23 = vpop.f32.mrf.mxu0 }
 0x15e   : > { %v884_v52 = vadd.f32 %v1562_v23, %v868_v44 }
 0x15f   : > { %v546_v31 = vpop.f32.mrf.mxu0 }
 0x160   : > { %v882_v49 = vadd.f32 %v866_v39, %v546_v31 }
 0x161   : > { %v1563_v35 = vpop.f32.mrf.mxu0 }
 0x162   : > { %v885_v45 = vadd.f32 %v1563_v35, %v869_v36  ;;  %v875_v35 = vmul.f32 %v859_v26, %v810_v21  ;;  %v1787_v36 = vpop.eup %1786 }
 0x163   : > { %v549_v46 = vpop.f32.mrf.mxu0  ;;  %v1789_v39 = vpop.eup %1788 }
 0x164   : > { %v883_v50 = vadd.f32 %v867_v40, %v549_v46  ;;  %v899_v62 = vpack.c.bf16 %v885_v45, %v884_v52  ;;  %v865_v45 = vadd.f32 1.0, %v1785_v4  ;;  %v814_v46 = vmul.f32 0.5, %v2148_v25 }
 0x165   : > { %v1566_v53 = vpop.f32.mrf.mxu0  ;;  %v864_v52 = vadd.f32 1.0, %v1789_v39 }
 0x166   : > { %v898_v55 = vpack.c.bf16 %v883_v50, %v882_v49  ;;  %v888_v17 = vadd.f32 %v1566_v53, %v872_v10  ;;  %v863_v49 = vadd.f32 1.0, %v1787_v36  ;;  %v815_v50 = vmul.f32 0.5, %v2150_v29  ;;  %v1750_v29 = vld [vmem:[%s2317_s7 + $0x38] sm:$0xff]   ;;  %v1757_v10 = vld [vmem:[%s2317_s7] sm:$0xff]  }
 0x167   : > { %v562_v0 = vpop.f32.mrf.mxu0  ;;  %1640 = vmatprep.subr.bf16.mxu0 %v1750_v29  ;;  %1672 = vmatprep.subr.bf16.mxu1 %v1750_v29 }
 0x168   : > { %1624 = vmatprep.mubr.bf16.mxu0 %v898_v55  ;;  %v886_v14 = vadd.f32 %v870_v3, %v562_v0  ;;  %v881_v55 = vmul.f32 %v865_v45, %v816_v42  ;;  %v879_v56 = vmul.f32 %v863_v49, %v814_v46  ;;  %v880_v22 = vmul.f32 %v864_v52, %v815_v50  ;;  %v1754_v3 = vld [vmem:[%s2317_s7 + $0x18] sm:$0xff]  }
 0x169   : > { %v1567_v1 = vpop.f32.mrf.mxu0  ;;  %1625 = vmatmul.mubr.bf16.vlgmr.msra.gmra.mxu0 %v899_v62  ;;  %1680 = vmatpush3.bf16.msra.mxu1 %v1750_v29 }
 0x16a   : > { %v889_v11 = vadd.f32 %v1567_v1, %v873_v2  ;;  %1641 = vmatpush3.bf16.msra.mxu0 %v1750_v29  ;;  %v1751_v1 = vld [vmem:[%s2317_s7 + $0x30] sm:$0xff]   ;;  %v1752_v2 = vld [vmem:[%s2317_s7 + $0x28] sm:$0xff]  }
 0x16b   : > { %v565_v12 = vpop.f32.mrf.mxu0  ;;  %1642 = vmatprep.subr.bf16.mxu0 %v1751_v1  ;;  %1673 = vmatprep.subr.bf16.mxu1 %v1751_v1 }
 0x16c   : > { %v887_v15 = vadd.f32 %v871_v8, %v565_v12  ;;  %v901_v28 = vpack.c.bf16 %v889_v11, %v888_v17  ;;  %v1755_v8 = vld [vmem:[%s2317_s7 + $0x10] sm:$0xff]   ;;  %v2193_v11 = vld [vmem:[%s2316_s6] ss:$0 sm:$0xff] }
 0x16d   : > { %v1570_v18 = vpop.f32.mrf.mxu0  ;;  %1681 = vmatpush3.bf16.msra.mxu1 %v1751_v1 }
 0x16e   : > { %v900_v23 = vpack.c.bf16 %v887_v15, %v886_v14  ;;  %v892_v43 = vadd.f32 %v1570_v18, %v876_v37  ;;  %1643 = vmatpush3.bf16.msra.mxu0 %v1751_v1  ;;  %1674 = vmatprep.subr.bf16.mxu1 %v1752_v2 }
 0x16f   : > { %v578_v31 = vpop.f32.mrf.mxu0  ;;  %1644 = vmatprep.subr.bf16.mxu0 %v1752_v2 }
 0x170   : > { %1628 = vmatprep.mubr.bf16.mxu0 %v900_v23  ;;  %v890_v40 = vadd.f32 %v874_v5, %v578_v31 }
 0x171   : > { %v1571_v33 = vpop.f32.mrf.mxu0  ;;  %1629 = vmatmul.mubr.bf16.gmra.mxu0 %v901_v28  ;;  %1682 = vmatpush3.bf16.msra.mxu1 %v1752_v2 }
 0x172   : > { %v893_v38 = vadd.f32 %v1571_v33, %v877_v34  ;;  %1645 = vmatpush3.bf16.msra.mxu0 %v1752_v2  ;;  %1675 = vmatprep.subr.bf16.mxu1 %v1753_v60 }
 0x173   : > { %v581_v6 = vpop.f32.mrf.mxu0  ;;  %1646 = vmatprep.subr.bf16.mxu0 %v1753_v60 }
 0x174   : > { %v891_v41 = vadd.f32 %v875_v35, %v581_v6  ;;  %v903_v51 = vpack.c.bf16 %v893_v38, %v892_v43 }
 0x175   : > { %v1574_v44 = vpop.f32.mrf.mxu0  ;;  %1683 = vmatpush3.bf16.msra.mxu1 %v1753_v60 }
 0x176   : > { %v902_v47 = vpack.c.bf16 %v891_v41, %v890_v40  ;;  %v896_v25 = vadd.f32 %v1574_v44, %v880_v22  ;;  %1647 = vmatpush3.bf16.msra.mxu0 %v1753_v60  ;;  %1676 = vmatprep.subr.bf16.mxu1 %v1754_v3 }
 0x177   : > { %v594_v53 = vpop.f32.mrf.mxu0  ;;  %1648 = vmatprep.subr.bf16.mxu0 %v1754_v3 }
 0x178   : > { %1632 = vmatprep.mubr.bf16.mxu0 %v902_v47  ;;  %v894_v62 = vadd.f32 %v878_v20, %v594_v53 }
 0x179   : > { %v1575_v54 = vpop.f32.mrf.mxu0  ;;  %1633 = vmatmul.mubr.bf16.gmra.mxu0 %v903_v51  ;;  %1684 = vmatpush3.bf16.msra.mxu1 %v1754_v3 }
 0x17a   : > { %v897_v57 = vadd.f32 %v1575_v54, %v881_v55  ;;  %1649 = vmatpush3.bf16.msra.mxu0 %v1754_v3  ;;  %1677 = vmatprep.subr.bf16.mxu1 %v1755_v8 }
 0x17b   : > { %v597_v58 = vpop.f32.mrf.mxu0  ;;  %1650 = vmatprep.subr.bf16.mxu0 %v1755_v8 }
 0x17c   : > { %v895_v63 = vadd.f32 %v879_v56, %v597_v58  ;;  %v905_v59 = vpack.c.bf16 %v897_v57, %v896_v25 }
 0x17d   : > { %1685 = vmatpush3.bf16.msra.mxu1 %v1755_v8 }
 0x17e   : > { %v904_v0 = vpack.c.bf16 %v895_v63, %v894_v62  ;;  %1651 = vmatpush3.bf16.msra.mxu0 %v1755_v8  ;;  %1678 = vmatprep.subr.bf16.mxu1 %v1756_v9 }
 0x17f   : > { %1652 = vmatprep.subr.bf16.mxu0 %v1756_v9 }
 0x180   : > { %1636 = vmatprep.mubr.bf16.mxu0 %v904_v0 }
 0x181   : > { %1637 = vmatmul.mubr.bf16.gmra.mxu0 %v905_v59  ;;  %1686 = vmatpush3.bf16.msra.mxu1 %v1756_v9 }
 0x182   : > { %1653 = vmatpush3.bf16.msra.mxu0 %v1756_v9  ;;  %1679 = vmatprep.subr.bf16.mxu1 %v1757_v10 }
 0x183   : > { %1654 = vmatprep.subr.bf16.mxu0 %v1757_v10 }
 0x185   : > { %1687 = vmatpush3.bf16.msra.mxu1 %v1757_v10 }
 0x186   : > { %1655 = vmatpush3.bf16.msra.mxu0 %v1757_v10 }
 0x229   : > { %v1626_v12 = vpop.f32.mrf.mxu0 }
 0x22a   : > { %v1020_v13 = vadd.f32 %v1626_v12, %v2193_v11 }
 0x22b   : > { %v1011_v14 = vpop.f32.mrf.mxu0 }
 0x22c   : > { %v1012_v15 = vadd.f32 %v2193_v11, %v1011_v14  ;;  %v1092_v61 = vmul.f32 0.70710677, %v1020_v13  ;;  %v1076_v57 = vmul.f32 0.5, %v1020_v13 }
 0x22d   : > { %v1627_v16 = vpop.f32.mrf.mxu0 }
 0x22e   : > { %v1090_v17 = vmul.f32 0.70710677, %v1012_v15  ;;  %v1023_v18 = vadd.f32 %v1627_v16, %v2193_v11  ;;  %v1074_v45 = vmul.f32 0.5, %v1012_v15 }
 0x22f   : > { %v1014_v19 = vpop.f32.mrf.mxu0 }
 0x230   : > { %1790 = verf.f32 %v1090_v17  ;;  %v1093_v21 = vmul.f32 0.70710677, %v1023_v18  ;;  %v1015_v23 = vadd.f32 %v2193_v11, %v1014_v19  ;;  %v1077_v53 = vmul.f32 0.5, %v1023_v18 }
 0x231   : > { %1792 = verf.f32 %v1092_v61  ;;  %v1630_v24 = vpop.f32.mrf.mxu0 }
 0x232   : > { %1794 = verf.f32 %v1093_v21  ;;  %v1091_v26 = vmul.f32 0.70710677, %v1015_v23  ;;  %v2200_v27 = vadd.f32 %v1630_v24, %v2193_v11  ;;  %v1075_v20 = vmul.f32 0.5, %v1015_v23 }
 0x233   : > { %v1027_v28 = vpop.f32.mrf.mxu0 }
 0x234   : > { %1796 = verf.f32 %v1091_v26  ;;  %v2203_v30 = vadd.f32 %v2193_v11, %v1027_v28  ;;  %v1096_v31 = vmul.f32 0.70710677, %v2200_v27  ;;  %v1080_v28 = vmul.f32 0.5, %v2200_v27 }
 0x235   : > { %v1631_v32 = vpop.f32.mrf.mxu0 }
 0x236   : > { %v1094_v33 = vmul.f32 0.70710677, %v2203_v30  ;;  %v1039_v34 = vadd.f32 %v1631_v32, %v2193_v11  ;;  %v1078_v23 = vmul.f32 0.5, %v2203_v30 }
 0x237   : > { %v1030_v4 = vpop.f32.mrf.mxu0 }
 0x238   : > { %1798 = verf.f32 %v1094_v33  ;;  %v1097_v5 = vmul.f32 0.70710677, %v1039_v34  ;;  %v1031_v35 = vadd.f32 %v2193_v11, %v1030_v4  ;;  %v1081_v19 = vmul.f32 0.5, %v1039_v34 }
 0x239   : > { %1800 = verf.f32 %v1096_v31  ;;  %v1634_v36 = vpop.f32.mrf.mxu0 }
 0x23a   : > { %1802 = verf.f32 %v1097_v5  ;;  %v1095_v37 = vmul.f32 0.70710677, %v1031_v35  ;;  %v2210_v38 = vadd.f32 %v1634_v36, %v2193_v11  ;;  %v1079_v24 = vmul.f32 0.5, %v1031_v35 }
 0x23b   : > { %v1043_v6 = vpop.f32.mrf.mxu0 }
 0x23c   : > { %1804 = verf.f32 %v1095_v37  ;;  %v1100_v39 = vmul.f32 0.70710677, %v2210_v38  ;;  %v2214_v41 = vadd.f32 %v2193_v11, %v1043_v6 }
 0x23d   : > { %v1791_v40 = vpop.eup %1790  ;;  %v1635_v7 = vpop.f32.mrf.mxu0 }
 0x23e   : > { %v1793_v42 = vpop.eup %1792  ;;  %v2217_v43 = vadd.f32 %v1635_v7, %v2193_v11  ;;  %v1098_v46 = vmul.f32 0.70710677, %v2214_v41  ;;  %v1122_v48 = vadd.f32 1.0, %v1791_v40  ;;  %1806 = verf.f32 %v1100_v39 }
 0x23f   : > { %v1795_v44 = vpop.eup %1794  ;;  %v1046_v47 = vpop.f32.mrf.mxu0  ;;  %v1124_v52 = vadd.f32 1.0, %v1793_v42  ;;  %v1082_v27 = vmul.f32 0.5, %v2214_v41 }
 0x240   : > { %v1125_v49 = vadd.f32 1.0, %v1795_v44  ;;  %v1101_v50 = vmul.f32 0.70710677, %v2217_v43  ;;  %1808 = verf.f32 %v1098_v46  ;;  %v1047_v54 = vadd.f32 %v2193_v11, %v1046_v47 }
 0x241   : > { %v1797_v51 = vpop.eup %1796  ;;  %v1638_v55 = vpop.f32.mrf.mxu0  ;;  %v1138_v25 = vmul.f32 %v1122_v48, %v1074_v45  ;;  %v1140_v29 = vmul.f32 %v1124_v52, %v1076_v57  ;;  %v1085_v7 = vmul.f32 0.5, %v2217_v43  ;;  %v1084_v45 = vmul.f32 0.5, %v2210_v38 }
 0x242   : > { %v1123_v56 = vadd.f32 1.0, %v1797_v51  ;;  %1810 = verf.f32 %v1101_v50  ;;  %v2223_v22 = vadd.f32 %v1638_v55, %v2193_v11  ;;  %v1141_v58 = vmul.f32 %v1125_v49, %v1077_v53 }
 0x243   : > { %v1099_v62 = vmul.f32 0.70710677, %v1047_v54  ;;  %v1059_v63 = vpop.f32.mrf.mxu0  ;;  %v1083_v42 = vmul.f32 0.5, %v1047_v54 }
 0x244   : > { %v1139_v0 = vmul.f32 %v1123_v56, %v1075_v20  ;;  %v1104_v1 = vmul.f32 0.70710677, %v2223_v22  ;;  %v1060_v2 = vadd.f32 %v2193_v11, %v1059_v63  ;;  %v1155_v12 = vpack.c.bf16 %v1141_v58, %v1140_v29 }
 0x245   : > { %v1799_v59 = vpop.eup %1798  ;;  %1812 = verf.f32 %v1099_v62  ;;  %v1639_v60 = vpop.f32.mrf.mxu0  ;;  %v1088_v62 = vmul.f32 0.5, %v2223_v22 }
 0x246   : > { %v1801_v3 = vpop.eup %1800  ;;  %v1071_v8 = vadd.f32 %v1639_v60, %v2193_v11  ;;  %v1154_v9 = vpack.c.bf16 %v1139_v0, %v1138_v25  ;;  %v1102_v13 = vmul.f32 0.70710677, %v1060_v2  ;;  %v1126_v15 = vadd.f32 1.0, %v1799_v59  ;;  %v1486_v60 = vld [vmem:[%s2318_s8] ss:$0 sm:$0xff] }
 0x247   : > { %v1803_v10 = vpop.eup %1802  ;;  %v1062_v14 = vpop.f32.mrf.mxu0  ;;  %1814 = verf.f32 %v1104_v1  ;;  %v1128_v18 = vadd.f32 1.0, %v1801_v3  ;;  %v1086_v54 = vmul.f32 0.5, %v1060_v2 }
 0x248   : > { %v1129_v61 = vadd.f32 1.0, %v1803_v10  ;;  %v1105_v16 = vmul.f32 0.70710677, %v1071_v8  ;;  %1656 = vmatprep.mubr.bf16.mxu0 %v1154_v9  ;;  %1816 = verf.f32 %v1102_v13  ;;  %v1063_v21 = vadd.f32 %v2193_v11, %v1062_v14 }
 0x249   : > { %v1805_v17 = vpop.eup %1804  ;;  %1657 = vmatmul.mubr.bf16.vlgmr.msra.gmra.mxu0 %v1155_v12  ;;  %v1142_v33 = vmul.f32 %v1126_v15, %v1078_v23  ;;  %v1144_v36 = vmul.f32 %v1128_v18, %v1080_v28  ;;  %v1089_v41 = vmul.f32 0.5, %v1071_v8 }
 0x24a   : > { %v1127_v26 = vadd.f32 1.0, %v1805_v17  ;;  %1818 = verf.f32 %v1105_v16  ;;  %v1145_v31 = vmul.f32 %v1129_v61, %v1081_v19  ;;  %v1103_v32 = vmul.f32 0.70710677, %v1063_v21 }
 0x24b   : > { %v1807_v5 = vpop.eup %1806  ;;  %v1087_v38 = vmul.f32 0.5, %v1063_v21 }
 0x24c   : > { %v1143_v4 = vmul.f32 %v1127_v26, %v1079_v24  ;;  %1820 = verf.f32 %v1103_v32  ;;  %v1157_v39 = vpack.c.bf16 %v1145_v31, %v1144_v36  ;;  %v1132_v35 = vadd.f32 1.0, %v1807_v5 }
 0x24d   : > { %v1809_v37 = vpop.eup %1808 }
 0x24e   : > { %v1156_v34 = vpack.c.bf16 %v1143_v4, %v1142_v33  ;;  %v1130_v40 = vadd.f32 1.0, %v1809_v37  ;;  %v1148_v51 = vmul.f32 %v1132_v35, %v1084_v45 }
 0x24f   : > { %v1811_v6 = vpop.eup %1810 }
 0x250   : > { %v1133_v11 = vadd.f32 1.0, %v1811_v6  ;;  %1660 = vmatprep.mubr.bf16.mxu1 %v1156_v34  ;;  %v1146_v48 = vmul.f32 %v1130_v40, %v1082_v27 }
 0x251   : > { %1661 = vmatmul.mubr.bf16.vlgmr.msra.gmra.mxu1 %v1157_v39 }
 0x252   : > { %v1813_v30 = vpop.eup %1812  ;;  %v1149_v46 = vmul.f32 %v1133_v11, %v1085_v7 }
 0x253   : > { %v1131_v44 = vadd.f32 1.0, %v1813_v30 }
 0x254   : > { %v1815_v47 = vpop.eup %1814  ;;  %v1159_v20 = vpack.c.bf16 %v1149_v46, %v1148_v51 }
 0x255   : > { %v1147_v49 = vmul.f32 %v1131_v44, %v1083_v42  ;;  %v1817_v50 = vpop.eup %1816  ;;  %v1136_v43 = vadd.f32 1.0, %v1815_v47 }
 0x256   : > { %v1134_v56 = vadd.f32 1.0, %v1817_v50 }
 0x257   : > { %v1819_v52 = vpop.eup %1818  ;;  %v1158_v53 = vpack.c.bf16 %v1147_v49, %v1146_v48  ;;  %v1152_v59 = vmul.f32 %v1136_v43, %v1088_v62 }
 0x258   : > { %v1137_v55 = vadd.f32 1.0, %v1819_v52  ;;  %v1150_v25 = vmul.f32 %v1134_v56, %v1086_v54 }
 0x259   : > { %1664 = vmatprep.mubr.bf16.mxu1 %v1158_v53  ;;  %v1821_v57 = vpop.eup %1820 }
 0x25a   : > { %1665 = vmatmul.mubr.bf16.gmra.mxu1 %v1159_v20  ;;  %v1135_v58 = vadd.f32 1.0, %v1821_v57  ;;  %v1153_v63 = vmul.f32 %v1137_v55, %v1089_v41 }
 0x25c   : > { %v1151_v0 = vmul.f32 %v1135_v58, %v1087_v38  ;;  %v1161_v1 = vpack.c.bf16 %v1153_v63, %v1152_v59 }
 0x25e   : > { %v1160_v29 = vpack.c.bf16 %v1151_v0, %v1150_v25 }
 0x260   : > { %1668 = vmatprep.mubr.bf16.mxu1 %v1160_v29 }
 0x262   : > { %1669 = vmatmul.mubr.bf16.gmra.mxu1 %v1161_v1 }
 0x309   : > { %v1658_v2 = vpop.f32.mrf.mxu0 }
 0x30a   : > { %v1276_v3 = vadd.f32 %v1658_v2, %v1486_v60 }
 0x30b   : > { %v1267_v8 = vpop.f32.mrf.mxu0 }
 0x30c   : > { %1332 = vst [vmem:[%s2241_s26 + $0x10] sm:$0xff] %v1276_v3  ;;  %v1268_v22 = vadd.f32 %v1486_v60, %v1267_v8 }
 0x30d   : > { %v1659_v9 = vpop.f32.mrf.mxu0 }
 0x30e   : > { %1330 = vst [vmem:[%s2241_s26] sm:$0xff] %v1268_v22  ;;  %v1279_v10 = vadd.f32 %v1659_v9, %v1486_v60 }
 0x30f   : > { %v1270_v12 = vpop.f32.mrf.mxu0 }
 0x310   : > { %1333 = vst [vmem:[%s2241_s26 + $0x18] sm:$0xff] %v1279_v10  ;;  %v1271_v13 = vadd.f32 %v1486_v60, %v1270_v12 }
 0x311   : > { %v1662_v14 = vpop.f32.mrf.mxu1 }
 0x312   : > { %1331 = vst [vmem:[%s2241_s26 + $0x8] sm:$0xff] %v1271_v13  ;;  %v1292_v15 = vadd.f32 %v1662_v14, %v1486_v60 }
 0x313   : > { %v1283_v61 = vpop.f32.mrf.mxu1 }
 0x314   : > { %1336 = vst [vmem:[%s2241_s26 + $0x30] sm:$0xff] %v1292_v15  ;;  %v1284_v16 = vadd.f32 %v1486_v60, %v1283_v61 }
 0x315   : > { %v1663_v17 = vpop.f32.mrf.mxu1 }
 0x316   : > { %1334 = vst [vmem:[%s2241_s26 + $0x20] sm:$0xff] %v1284_v16  ;;  %v1295_v18 = vadd.f32 %v1663_v17, %v1486_v60 }
 0x317   : > { %v1286_v19 = vpop.f32.mrf.mxu1 }
 0x318   : > { %1337 = vst [vmem:[%s2241_s26 + $0x38] sm:$0xff] %v1295_v18  ;;  %v1287_v21 = vadd.f32 %v1486_v60, %v1286_v19 }
 0x31a   : > { %1335 = vst [vmem:[%s2241_s26 + $0x28] sm:$0xff] %v1287_v21  ;;  %v1666_v23 = vpop.f32.mrf.mxu1 }
 0x31b   : > { %v1308_v24 = vadd.f32 %v1666_v23, %v1486_v60 }
 0x31c   : > { %v1299_v26 = vpop.f32.mrf.mxu1 }
 0x31d   : > { %1340 = vst [vmem:[%s2241_s26 + $0x50] sm:$0xff] %v1308_v24  ;;  %v1300_v28 = vadd.f32 %v1486_v60, %v1299_v26 }
 0x31e   : > { %v1667_v31 = vpop.f32.mrf.mxu1 }
 0x31f   : > { %1338 = vst [vmem:[%s2241_s26 + $0x40] sm:$0xff] %v1300_v28  ;;  %v1311_v32 = vadd.f32 %v1667_v31, %v1486_v60 }
 0x320   : > { %v1302_v33 = vpop.f32.mrf.mxu1 }
 0x321   : > { %1341 = vst [vmem:[%s2241_s26 + $0x58] sm:$0xff] %v1311_v32  ;;  %v1303_v4 = vadd.f32 %v1486_v60, %v1302_v33 }
 0x322   : > { %v1670_v5 = vpop.f32.mrf.mxu1 }
 0x323   : > { %1339 = vst [vmem:[%s2241_s26 + $0x48] sm:$0xff] %v1303_v4  ;;  %v1324_v36 = vadd.f32 %v1670_v5, %v1486_v60 }
 0x324   : > { %v1315_v37 = vpop.f32.mrf.mxu1 }
 0x325   : > { %1344 = vst [vmem:[%s2241_s26 + $0x70] sm:$0xff] %v1324_v36  ;;  %v1316_v34 = vadd.f32 %v1486_v60, %v1315_v37 }
 0x326   : > { %v1671_v6 = vpop.f32.mrf.mxu1 }
 0x327   : > { %1342 = vst [vmem:[%s2241_s26 + $0x60] sm:$0xff] %v1316_v34  ;;  %v1327_v39 = vadd.f32 %v1671_v6, %v1486_v60 }
 0x328   : > { %v1318_v11 = vpop.f32.mrf.mxu1 }
 0x329   : > { %1345 = vst [vmem:[%s2241_s26 + $0x78] sm:$0xff] %v1327_v39  ;;  %v1319_v40 = vadd.f32 %v1486_v60, %v1318_v11 }
 0x32b   : > { %1343 = vst [vmem:[%s2241_s26 + $0x68] sm:$0xff] %v1319_v40 }
 0x32c   : > { %1835 = shalt.err (!%p1832_p3)
}
 0x32d   : > { %s1836_s29 = scalar_lea.hbm %s2262_s21, 2048  ;;  %s1840_s28 = scalar_lea.hbm %s2319_s9, 4096 }
 0x32e   : > { %p1837_p4 = scmp.ne.s32.totalorder %s2262_s21, %s1836_s29  ;;  %p1841_p9 = scmp.lt.s32.totalorder %s2262_s21, %s2319_s9 }
 0x32f   : > { %p1842_p10 = scmp.lt.s32.totalorder %s1840_s28, %s1836_s29 }
 0x330   : > { %p1838_p7 = pnand %p1837_p4, %p1977_p5 }
 0x331   : > { %p1843_p11 = por %p1842_p10, %p1841_p9 }
 0x332   : > { %p1839_p8 = pneg %p1838_p7 }
 0x334   : > { %p1844_p12 = pnand %p1843_p11, %p1839_p8 }
 0x336   : > { %1847 = shalt.err (!%p1844_p12)
}
 0x337   : > { %s1887_s22 = smov 128   ;;  %s1888_s23 = smov 8  }
 0x338   : > { %1688 = dma.vmem_to_hbm [thread:$0]  (%p1977_p5), %s2264_s14, 2048, %s2262_s21, %s2270_s13, %s1887_s22, %s1887_s22, %s1888_s23  }
 0x339 PF: > { %p1694_p13 = scmp.ge.s32.totalorder %s1882_s12, 2  ;;  %s1375_s25 = sand.u32 1, %s1870_s30  }
 0x33a   : > { %s1376_s24 = scalar_lea.sflag [#allocation3], %s1375_s25 }
 0x33b   : > { %p1691_p0 = pnand %p1694_p13, %p1981_p6 }
 0x33d   : > { %p1692_p1 = pneg %p1691_p0 }
 0x33f   : > { %1865 = dma.done.wait (%p1692_p1), %s1376_s24, 2048  }
 0x340   : > { %1867 = vsyncadd (%p1692_p1), %s1376_s24, 4294965248  ;;  %p19_p2 = scmp.ge.s32.totalorder %s1964_s15, 4   ;;  %s2322_s30 = smov %s1874_s10 }
 0x341   : > { %s2323_s10 = smov %s1878_s11  ;;  %s2324_s11 = smov %s1975_s18 }
 0x342   : > { %s2325_s12 = smov %s1964_s15  ;;  %21 = sbr.rel (!%p19_p2) target bundleno = 3 (0x3), region = 94 }
 0x347   :  { %1381 = vsyncpa [#allocation3], 1 }
 0x348   :  { %1383 = vsyncpa [#allocation3 + $0x1], 1 }

</bundles_post_ra>
